<compile_context>
chip_gen: v5e
topology: v5e:2x2
jax: 0.10.0
libtpu: 0.0.40
codegen_flags: <defaults>
</compile_context>

<pallas_src>
import functools

import jax
import jax.numpy as jnp
from jax.experimental import pallas as pl
from jax.experimental.pallas import tpu as pltpu

_F32_MIN = float(jnp.finfo(jnp.float32).min)


def _round_up(x: int, m: int) -> int:
    return ((x + m - 1) // m) * m


# --------------------------------------------------------------------------
# Kernel 1: single pass over the full class axis (tile_c == C).
# --------------------------------------------------------------------------
def _ls_single_pass_kernel(logits_ref, target_ref, out_ref, *,
                           smoothing, num_classes, total_n, tile_n):
    i = pl.program_id(0)

    # Upcast to f32 in-kernel (mandatory on v5e: no bf16 VPU/EUP); HBM traffic
    # stays at the native dtype width.
    x = logits_ref[...].astype(jnp.float32)                    # (tile_n, C)
    t = target_ref[...]                                        # (tile_n, 1)

    m = jnp.max(x, axis=-1, keepdims=True)
    lse = m + jnp.log(jnp.sum(jnp.exp(x - m), axis=-1, keepdims=True))

    col = jax.lax.broadcasted_iota(jnp.int32, x.shape, 1)
    x_t = jnp.sum(jnp.where(col == t, x, 0.0), axis=-1, keepdims=True)
    sum_x = jnp.sum(x, axis=-1, keepdims=True)

    per_row = (lse
               - (1.0 - smoothing) * x_t
               - (smoothing / num_classes) * sum_x)            # (tile_n, 1)

    # Mask rows past the true N BEFORE the scalar reduction (block padding
    # holds unspecified values and may produce inf/NaN above).
    row_ids = i * tile_n + jax.lax.broadcasted_iota(jnp.int32, (tile_n, 1), 0)
    partial = jnp.sum(jnp.where(row_ids < total_n, per_row, 0.0))

    # Lane-dense (1, 128) partial: value in lane 0, zeros elsewhere.
    lane = jax.lax.broadcasted_iota(jnp.int32, (1, 128), 1)
    out_ref[...] = jnp.where(lane == 0, partial, 0.0)


# --------------------------------------------------------------------------
# Kernel 2: class-tiled online (rescaled) logsumexp, for vocab-scale C.
# Grid = (row tiles ["parallel"], class tiles ["arbitrary", innermost]).
# --------------------------------------------------------------------------
def _ls_online_kernel(logits_ref, target_ref, out_ref,
                      m_run, l_run, sumx_run, xt_run, *,
                      smoothing, num_classes, total_n, tile_n, tile_c):
    i = pl.program_id(0)
    j = pl.program_id(1)
    n_c_tiles = pl.num_programs(1)

    @pl.when(j == 0)
    def _():
        m_run[...] = jnp.full((tile_n, 1), _F32_MIN, jnp.float32)
        l_run[...] = jnp.zeros((tile_n, 1), jnp.float32)
        sumx_run[...] = jnp.zeros((tile_n, 1), jnp.float32)
        xt_run[...] = jnp.zeros((tile_n, 1), jnp.float32)

    x = logits_ref[...].astype(jnp.float32)                    # (tile_n, tile_c)
    t = target_ref[...]                                        # (tile_n, 1)

    col = tile_c * j + jax.lax.broadcasted_iota(
        jnp.int32, (tile_n, tile_c), 1)                        # global class ids
    valid = col < num_classes                                  # ragged last C tile

    # Online rescaled logsumexp along the class axis.
    tile_max = jnp.max(jnp.where(valid, x, _F32_MIN), axis=-1, keepdims=True)
    m_new = jnp.maximum(m_run[...], tile_max)
    p = jnp.where(valid, jnp.exp(x - m_new), 0.0)
    l_run[...] = (l_run[...] * jnp.exp(m_run[...] - m_new)
                  + jnp.sum(p, axis=-1, keepdims=True))
    m_run[...] = m_new
    # Plain running sums (no rescaling needed for the linear terms).
    sumx_run[...] += jnp.sum(jnp.where(valid, x, 0.0), axis=-1, keepdims=True)
    xt_run[...] += jnp.sum(jnp.where(col == t, x, 0.0), axis=-1, keepdims=True)

    @pl.when(j == n_c_tiles - 1)
    def _():
        lse = m_run[...] + jnp.log(l_run[...])
        per_row = (lse
                   - (1.0 - smoothing) * xt_run[...]
                   - (smoothing / num_classes) * sumx_run[...])
        # Row mask BEFORE the scalar reduction (see correctness note above).
        row_ids = i * tile_n + jax.lax.broadcasted_iota(jnp.int32, (tile_n, 1), 0)
        partial = jnp.sum(jnp.where(row_ids < total_n, per_row, 0.0))
        lane = jax.lax.broadcasted_iota(jnp.int32, (1, 128), 1)
        out_ref[...] = jnp.where(lane == 0, partial, 0.0)


# --------------------------------------------------------------------------
# Wrapper: tile selection from an explicit VMEM working-set budget + mean.
# --------------------------------------------------------------------------
_VMEM_BUDGET = 20 * 1024 * 1024          # target working set (fits all gens)
_VMEM_LIMIT = 32 * 1024 * 1024           # scoped-VMEM limit requested


def _bytes_per_row(tile_c, itemsize, online):
    # 2x double-buffered logits rows (native dtype) + ~4 full-width f32
    # temporaries + 2x lane-padded (128-lane) int32 target rows
    # + (online only) 4 lane-padded f32 scratch accumulators.
    per = tile_c * (2 * itemsize + 4 * 4) + 2 * 128 * 4
    if online:
        per += 4 * 128 * 4
    return per


@functools.partial(jax.jit,
                   static_argnames=("smoothing", "num_classes",
                                    "tile_n", "tile_c"))
def label_smoothing_loss(logits, target, *, smoothing=0.1, num_classes=None,
                         tile_n=None, tile_c=None):
    """logits: (N, C) float (any float dtype); target: (N,) int. Scalar f32."""
    n, c = logits.shape
    if num_classes is None:
        num_classes = c
    assert num_classes == c

    itemsize = logits.dtype.itemsize
    # Sublane granularity for the second-minor block dim (f32: 8, bf16: 16).
    sub = 8 if itemsize >= 4 else (16 if itemsize == 2 else 32)

    # ---- class-axis tiling decision -------------------------------------
    if tile_c is None:
        if _bytes_per_row(c, itemsize, online=False) * sub <= _VMEM_BUDGET:
            tile_c = c                                   # single pass over C
        else:
            # Largest 128-multiple width that still leaves >= `sub` rows.
            tc = (_VMEM_BUDGET // sub - 6 * 128 * 4) // (2 * itemsize + 16)
            tile_c = max(128, (tc // 128) * 128)
    num_c_tiles = pl.cdiv(c, tile_c)
    if num_c_tiles == 1:
        tile_c = c                                       # exact-fit block
    assert tile_c == c or tile_c % 128 == 0
    online = num_c_tiles > 1

    # ---- row-axis tile from the byte budget ------------------------------
    if tile_n is None:
        fit = _VMEM_BUDGET // _bytes_per_row(tile_c, itemsize, online)
        tile_n = max(sub, (min(8192, fit) // sub) * sub)
        tile_n = min(tile_n, _round_up(n, sub))
    assert tile_n % sub == 0
    num_n_tiles = pl.cdiv(n, tile_n)

    target2d = target.astype(jnp.int32).reshape(n, 1)

    if not online:
        kernel = functools.partial(
            _ls_single_pass_kernel,
            smoothing=float(smoothing), num_classes=int(c),
            total_n=int(n), tile_n=int(tile_n))
        grid = (num_n_tiles,)
        in_specs = [pl.BlockSpec((tile_n, c), lambda i: (i, 0)),
                    pl.BlockSpec((tile_n, 1), lambda i: (i, 0))]
        out_specs = pl.BlockSpec((1, 128), lambda i: (i, 0))
        scratch = []
        dims = ("parallel",)
    else:
        kernel = functools.partial(
            _ls_online_kernel,
            smoothing=float(smoothing), num_classes=int(c),
            total_n=int(n), tile_n=int(tile_n), tile_c=int(tile_c))
        grid = (num_n_tiles, num_c_tiles)
        in_specs = [pl.BlockSpec((tile_n, tile_c), lambda i, j: (i, j)),
                    pl.BlockSpec((tile_n, 1), lambda i, j: (i, 0))]
        out_specs = pl.BlockSpec((1, 128), lambda i, j: (i, 0))
        scratch = [pltpu.VMEM((tile_n, 1), jnp.float32)] * 4
        dims = ("parallel", "arbitrary")

    cost = pl.CostEstimate(
        flops=int(6 * n * c),
        transcendentals=int(n * c),
        bytes_accessed=int(n * c * itemsize + n * 4 + num_n_tiles * 128 * 4))

    partials = pl.pallas_call(
        kernel,
        out_shape=jax.ShapeDtypeStruct((num_n_tiles, 128), jnp.float32),
        grid_spec=pltpu.PrefetchScalarGridSpec(
            num_scalar_prefetch=0,
            grid=grid,
            in_specs=in_specs,
            out_specs=out_specs,
            scratch_shapes=scratch),
        compiler_params=pltpu.CompilerParams(
            dimension_semantics=dims,
            vmem_limit_bytes=_VMEM_LIMIT),
        cost_estimate=cost,
    )(logits, target2d)

    # Final reduction + mean over the TRUE row count in plain JAX.
    return jnp.sum(partials) / jnp.float32(n)


# --------------------------------------------------------------------------
# Pure-JAX reference (mirrors the PyTorch module exactly).
# --------------------------------------------------------------------------
def _reference_loss(logits, target, smoothing=0.1):
    n, c = logits.shape
    dists = ((1.0 - smoothing) * jnp.eye(c, dtype=jnp.float32)
             + smoothing * jnp.full((c, c), 1.0 / c, dtype=jnp.float32))
    soft = dists[target]                                     # (N, C)
    logp = jax.nn.log_softmax(logits.astype(jnp.float32), axis=-1)
    return jnp.mean(-jnp.sum(soft * logp, axis=-1))


if __name__ == "__main__":
    key = jax.random.PRNGKey(0)
    k1, k2, k3, k4, k5, k6 = jax.random.split(key, 6)

    # 1) Primary small check (single-pass path, one tile).
    N, C = 8, 32
    logits = jax.random.normal(k1, (N, C), dtype=jnp.float32)
    target = jax.random.randint(k2, (N,), 0, C, dtype=jnp.int32)
    loss = jax.block_until_ready(
        label_smoothing_loss(logits, target, smoothing=0.1, num_classes=C))
    ref = _reference_loss(logits, target, smoothing=0.1)
    assert jnp.allclose(loss, ref, rtol=1e-5, atol=1e-5), (loss, ref)

    # 2) Multiple row tiles + ragged last row tile.
    N2, C2 = 40, 32
    logits2 = jax.random.normal(k3, (N2, C2), dtype=jnp.float32)
    target2 = jax.random.randint(k4, (N2,), 0, C2, dtype=jnp.int32)
    loss2 = jax.block_until_ready(
        label_smoothing_loss(logits2, target2, smoothing=0.1,
                             num_classes=C2, tile_n=16))
    ref2 = _reference_loss(logits2, target2, smoothing=0.1)
    assert jnp.allclose(loss2, ref2, rtol=1e-5, atol=1e-5), (loss2, ref2)

    # 3) Class-tiled online-LSE path (ragged last class tile) — the
    #    vocab-scale / v7x fallback, exercised here at a small shape.
    N3, C3 = 24, 160
    logits3 = jax.random.normal(k5, (N3, C3), dtype=jnp.float32)
    target3 = jax.random.randint(k6, (N3,), 0, C3, dtype=jnp.int32)
    loss3 = jax.block_until_ready(
        label_smoothing_loss(logits3, target3, smoothing=0.1,
                             num_classes=C3, tile_c=128))
    ref3 = _reference_loss(logits3, target3, smoothing=0.1)
    assert jnp.allclose(loss3, ref3, rtol=1e-5, atol=1e-5), (loss3, ref3)

    print("KERNEL_OK")
</pallas_src>

<mosaic_0001>
module attributes {stable_mosaic.version = 11 : i64} {
  func.func @_ls_single_pass_kernel(%arg0: i32, %arg1: memref<8x32xf32, #tpu.memory_space<vmem>>, %arg2: memref<8x1xi32, #tpu.memory_space<vmem>>, %arg3: memref<1x128xf32, #tpu.memory_space<vmem>>) attributes {dimension_semantics = [#tpu.dimension_semantics<parallel>], iteration_bounds = array<i64: 1>, scalar_prefetch = 0 : i64, scratch_operands = 0 : i64, tpu.core_type = #tpu.core_type<tc>, window_params = [{transform_indices = @transform_0, window_bounds = array<i64: 8, 32>}, {transform_indices = @transform_1, window_bounds = array<i64: 8, 1>}, {transform_indices = @transform_2, window_bounds = array<i64: 1, 128>}]} {
    %c0 = arith.constant 0 : index
    %c0_0 = arith.constant 0 : index
    %0 = vector.load %arg1[%c0, %c0_0] : memref<8x32xf32, #tpu.memory_space<vmem>>, vector<8x32xf32>
    %c0_1 = arith.constant 0 : index
    %c0_2 = arith.constant 0 : index
    %1 = vector.load %arg2[%c0_1, %c0_2] : memref<8x1xi32, #tpu.memory_space<vmem>>, vector<8x1xi32>
    %cst = arith.constant dense<0xFF800000> : vector<8xf32>
    %2 = vector.multi_reduction <maximumf>, %0, %cst [1] : vector<8x32xf32> to vector<8xf32>
    %3 = vector.shape_cast %2 : vector<8xf32> to vector<8x1xf32>
    %4 = vector.broadcast %3 : vector<8x1xf32> to vector<8x32xf32>
    %5 = arith.subf %0, %4 : vector<8x32xf32>
    %6 = math.exp %5 : vector<8x32xf32>
    %cst_3 = arith.constant dense<0.000000e+00> : vector<8xf32>
    %7 = vector.multi_reduction <add>, %6, %cst_3 [1] : vector<8x32xf32> to vector<8xf32>
    %8 = vector.shape_cast %7 : vector<8xf32> to vector<8x1xf32>
    %9 = math.log %8 : vector<8x1xf32>
    %10 = arith.addf %3, %9 : vector<8x1xf32>
    %11 = tpu.iota {dimensions = array<i32: 1>} : vector<8x32xi32>
    %12 = vector.broadcast %1 : vector<8x1xi32> to vector<8x32xi32>
    %13 = arith.cmpi eq, %11, %12 : vector<8x32xi32>
    %cst_4 = arith.constant 0.000000e+00 : f32
    %14 = vector.broadcast %cst_4 : f32 to vector<8x32xf32>
    %15 = arith.select %13, %0, %14 : vector<8x32xi1>, vector<8x32xf32>
    %cst_5 = arith.constant dense<0.000000e+00> : vector<8xf32>
    %16 = vector.multi_reduction <add>, %15, %cst_5 [1] : vector<8x32xf32> to vector<8xf32>
    %17 = vector.shape_cast %16 : vector<8xf32> to vector<8x1xf32>
    %cst_6 = arith.constant dense<0.000000e+00> : vector<8xf32>
    %18 = vector.multi_reduction <add>, %0, %cst_6 [1] : vector<8x32xf32> to vector<8xf32>
    %19 = vector.shape_cast %18 : vector<8xf32> to vector<8x1xf32>
    %cst_7 = arith.constant 0.899999976 : f32
    %20 = vector.broadcast %cst_7 : f32 to vector<8x1xf32>
    %21 = arith.mulf %20, %17 : vector<8x1xf32>
    %22 = arith.subf %10, %21 : vector<8x1xf32>
    %cst_8 = arith.constant 3.125000e-03 : f32
    %23 = vector.broadcast %cst_8 : f32 to vector<8x1xf32>
    %24 = arith.mulf %23, %19 : vector<8x1xf32>
    %25 = arith.subf %22, %24 : vector<8x1xf32>
    %c8_i32 = arith.constant 8 : i32
    %26 = arith.muli %arg0, %c8_i32 : i32
    %27 = tpu.iota {dimensions = array<i32: 0>} : vector<8x1xi32>
    %28 = vector.broadcast %26 : i32 to vector<8x1xi32>
    %29 = arith.addi %28, %27 : vector<8x1xi32>
    %c8_i32_9 = arith.constant 8 : i32
    %30 = vector.broadcast %c8_i32_9 : i32 to vector<8x1xi32>
    %31 = arith.cmpi slt, %29, %30 : vector<8x1xi32>
    %cst_10 = arith.constant 0.000000e+00 : f32
    %32 = vector.broadcast %cst_10 : f32 to vector<8x1xf32>
    %33 = arith.select %31, %25, %32 : vector<8x1xi1>, vector<8x1xf32>
    %34 = vector.shape_cast %33 : vector<8x1xf32> to vector<1x8x1xf32>
    %cst_11 = arith.constant dense<0.000000e+00> : vector<1xf32>
    %35 = vector.multi_reduction <add>, %34, %cst_11 [1, 2] : vector<1x8x1xf32> to vector<1xf32>
    %36 = vector.shape_cast %35 : vector<1xf32> to vector<1x1x1xf32>
    %37 = vector.extract %36[0, 0, 0] : f32 from vector<1x1x1xf32>
    %38 = tpu.iota {dimensions = array<i32: 1>} : vector<1x128xi32>
    %c0_i32 = arith.constant 0 : i32
    %39 = vector.broadcast %c0_i32 : i32 to vector<1x128xi32>
    %40 = arith.cmpi eq, %38, %39 : vector<1x128xi32>
    %cst_12 = arith.constant 0.000000e+00 : f32
    %41 = vector.broadcast %37 : f32 to vector<1x128xf32>
    %42 = vector.broadcast %cst_12 : f32 to vector<1x128xf32>
    %43 = arith.select %40, %41, %42 : vector<1x128xi1>, vector<1x128xf32>
    %c0_13 = arith.constant 0 : index
    %c0_14 = arith.constant 0 : index
    %44 = vector.load %arg3[%c0_13, %c0_14] : memref<1x128xf32, #tpu.memory_space<vmem>>, vector<1x128xf32>
    tpu.vector_store %arg3[%c0_13, %c0_14], %43 {strides = array<i32>} : memref<1x128xf32, #tpu.memory_space<vmem>>, vector<1x128xf32>,
    return
  }
  func.func @transform_0(%arg0: i32) -> (i32, i32) {
    %c0_i32 = arith.constant 0 : i32
    %c0_i32_0 = arith.constant 0 : i32
    return %arg0, %c0_i32 : i32, i32
  }
  func.func @transform_1(%arg0: i32) -> (i32, i32) {
    %c0_i32 = arith.constant 0 : i32
    %c0_i32_0 = arith.constant 0 : i32
    return %arg0, %c0_i32 : i32, i32
  }
  func.func @transform_2(%arg0: i32) -> (i32, i32) {
    %c0_i32 = arith.constant 0 : i32
    %c0_i32_0 = arith.constant 0 : i32
    return %arg0, %c0_i32 : i32, i32
  }
}

</mosaic_0001>

<bundles_post_ra>
// kernel: label_smoothing_loss.1
= control target key start
LH: loop header
LB: loop body
LE: loop exit
PB: predicated region body
PF: predicated region fallthrough
CT: control target
= control target key end

     0   :  { %vm13_vm0 = vcmask 261120   ;;  %v77_v1 = vmov 0   ;;  %v26_v10 = vlaneseq  ;;  %vm50_vm2 = vcmask 7168   ;;  %s106_s0 = inlined_call_operand.vmem [shape: f32[8,32], index: 0, kind: input, shape index: {}]   ;;  %s107_s1 = inlined_call_operand.vmem [shape: s32[8,1], index: 1, kind: input, shape index: {}]   ;;  %s108_s2 = inlined_call_operand.vmem [shape: f32[1,128], index: 2, kind: output, shape index: {}]  }
   0x1   :  { %v11_v0 = vld [vmem:[%s106_s0] sm:$0xff]  ;;  %72 = vset.pattern.permute.xlu0 %v77_v1 }
   0x2   :  { %v14_v2 = vsel %vm13_vm0, %v11_v0, -inf  ;;  %v12_v3 = vld [vmem:[%s107_s1] sm:$0xff]  ;;  %v36_v4 = vsel %vm13_vm0, %v11_v0, 0.0  ;;  %v27_v11 = vand.u32 127, %v26_v10 }
   0x3   :  { %15 = vmax.xlane.f32.xlu0 %v14_v2  ;;  %37 = vadd.xlane.f32.xlu2 %v36_v4 }
   0x4   :  { %vm61_vm3 = vcmp.eq.s32.totalorder %v27_v11, 0 }
  0x17   :  { %29 = vperm.xlu0 %72, %v12_v3  }
  0x76   :  { %v16_v5 = vpop.xlane.xlu0 %15  ;;  %v38_v18 = vpop.xlane.xlu2 %37 }
  0x77   :  { %v17_v6 = vsub.f32 %v11_v0, %v16_v5  ;;  %v41_v22 = vmul.f32 0.003125, %v38_v18 }
  0x79   :  { %v18_v7 = vmul.f32 1.442695, %v17_v6 }
  0x7b   :  { %73 = vpow2.f32 %v18_v7 }
  0x81   :  { %v74_v8 = vpop.eup %73 }
  0x82   :  { %v20_v9 = vsel %vm13_vm0, %v74_v8, 0.0 }
  0x83   :  { %21 = vadd.xlane.f32.xlu1 %v20_v9 }
  0x89   :  { %v30_v12 = vpop.permute.xlu0 %29 }
  0x8a   :  { %vm31_vm1 = vcmp.eq.s32.totalorder %v27_v11, %v30_v12 }
  0x8b   :  { %v32_v13 = vsel %vm31_vm1, %v11_v0, 0.0 }
  0x8c   :  { %v33_v14 = vsel %vm13_vm0, %v32_v13, 0.0 }
  0x8d   :  { %34 = vadd.xlane.f32.xlu1 %v33_v14 }
  0xf6   :  { %v22_v15 = vpop.xlane.xlu1 %21 }
  0xf7   :  { %75 = vlog2.f32 %v22_v15 }
  0xfd   :  { %v76_v16 = vpop.eup %75 }
  0xfe   :  { %v24_v17 = vmul.f32 0.6931472, %v76_v16 }
 0x100   :  { %v25_v19 = vadd.f32 %v24_v17, %v16_v5  ;;  %v35_v20 = vpop.xlane.xlu1 %34 }
 0x101   :  { %v39_v21 = vmul.f32 0.9, %v35_v20 }
 0x103   :  { %v40_v23 = vsub.f32 %v25_v19, %v39_v21 }
 0x105   :  { %v42_v24 = vsub.f32 %v40_v23, %v41_v22 }
 0x107   :  { %v51_v25 = vsel %vm50_vm2, %v42_v24, 0.0 }
 0x108   :  { %52 = vadd.xlane.f32.xlu2 %v51_v25 }
 0x17b   :  { %v53_v26 = vpop.xlane.xlu2 %52 }
 0x17c   :  { %v54_v27 = vrot.slane %v53_v26, 4 }
 0x17e   :  { %v55_v28 = vadd.f32 %v54_v27, %v53_v26 }
 0x180   :  { %v56_v29 = vrot.slane %v55_v28, 2 }
 0x182   :  { %v57_v30 = vadd.f32 %v56_v29, %v55_v28 }
 0x184   :  { %v58_v31 = vrot.slane %v57_v30, 1 }
 0x186   :  { %v59_v32 = vadd.f32 %v58_v31, %v57_v30 }
 0x188   :  { %69 = vpush %v59_v32 }
 0x1b9   :  { %s70_s0 = spop %69 }
 0x1ba   :  { %v62_v33 = vstv %s70_s0 }
 0x1bb   :  { %v63_v34 = vsel %vm61_vm3, %v62_v33, 0.0 }
 0x1bc   :  { %64 = vst [vmem:[%s108_s2] sm:$0x1] %v63_v34 }

</bundles_post_ra>
